<compile_context>
chip_gen: v7x
topology: tpu7x:2x2x1
jax: 0.10.0
libtpu: 0.0.40
codegen_flags: <defaults>
</compile_context>

<pallas_src>
import functools

import jax
import jax.numpy as jnp
from jax import lax
from jax.experimental import pallas as pl
from jax.experimental.pallas import tpu as pltpu

# ----------------------------- config -----------------------------
VOCAB = 64
HIDDEN = 128          # stand-in for 768
NUM_HEADS = 2
HEAD_DIM = HIDDEN // NUM_HEADS
FFN = 256             # stand-in for 3072
NUM_LAYERS = 2        # stand-in for 12
MAX_POS = 32
LABEL_NUM = 4
FC_PAD = 128          # lane-dense padded classifier width
LN_EPS = 1e-12


# ----------------------------- tiling helper -----------------------------
def _pick_tile(dim, target, align):
    """Largest multiple of `align` that divides `dim` and is <= target.

    Falls back to the full dim (always a valid Pallas block)."""
    if dim <= target:
        return dim
    t = (target // align) * align
    while t >= align:
        if dim % t == 0:
            return t
        t -= align
    return dim


# ----------------------------- dense (tiled matmul + bias [+ GELU]) -------
def _dense_kernel(x_ref, w_ref, b_ref, o_ref, acc_ref, *, activation):
    @pl.when(pl.program_id(2) == 0)
    def _init():
        acc_ref[...] = jnp.zeros_like(acc_ref)

    acc_ref[...] += jnp.dot(
        x_ref[...].astype(jnp.bfloat16),
        w_ref[...].astype(jnp.bfloat16),
        preferred_element_type=jnp.float32)

    @pl.when(pl.program_id(2) == pl.num_programs(2) - 1)
    def _finalize():
        out = acc_ref[...] + b_ref[...]
        if activation == "gelu":
            out = jax.nn.gelu(out)               # f32 epilogue (v5e-safe)
        o_ref[...] = out.astype(o_ref.dtype)


def dense(x, w, b, activation=None, tm=256, tn=512, tk=512):
    """out = act(x @ w + b); (M, N, K) tiled, bf16 MXU inputs, f32 accumulate."""
    M, K = x.shape
    N = w.shape[1]
    TM = _pick_tile(M, tm, 8)
    TN = _pick_tile(N, tn, 128)
    TK = _pick_tile(K, tk, 128)
    assert M % TM == 0 and N % TN == 0 and K % TK == 0
    grid = (M // TM, N // TN, K // TK)
    cost = pl.CostEstimate(
        flops=2 * M * N * K,
        transcendentals=(M * N if activation == "gelu" else 0),
        bytes_accessed=4 * (M * K + K * N + M * N + N))
    return pl.pallas_call(
        functools.partial(_dense_kernel, activation=activation),
        out_shape=jax.ShapeDtypeStruct((M, N), jnp.float32),
        grid=grid,
        in_specs=[
            pl.BlockSpec((TM, TK), lambda i, j, k: (i, k)),
            pl.BlockSpec((TK, TN), lambda i, j, k: (k, j)),
            pl.BlockSpec((1, TN), lambda i, j, k: (0, j)),
        ],
        out_specs=pl.BlockSpec((TM, TN), lambda i, j, k: (i, j)),
        scratch_shapes=[pltpu.VMEM((TM, TN), jnp.float32)],
        compiler_params=pltpu.CompilerParams(
            dimension_semantics=("parallel", "parallel", "arbitrary")),
        cost_estimate=cost,
    )(x, w, b.reshape(1, N))


# ------------- fused: matmul + bias + residual + LayerNorm ----------------
def _dense_res_ln_kernel(x_ref, w_ref, b_ref, r_ref, g_ref, bb_ref, o_ref, acc_ref):
    @pl.when(pl.program_id(1) == 0)
    def _init():
        acc_ref[...] = jnp.zeros_like(acc_ref)

    acc_ref[...] += jnp.dot(
        x_ref[...].astype(jnp.bfloat16),
        w_ref[...].astype(jnp.bfloat16),
        preferred_element_type=jnp.float32)

    @pl.when(pl.program_id(1) == pl.num_programs(1) - 1)
    def _finalize():
        y = acc_ref[...] + b_ref[...] + r_ref[...]            # f32
        mean = jnp.mean(y, axis=-1, keepdims=True)
        var = jnp.mean(jnp.square(y - mean), axis=-1, keepdims=True)
        norm = (y - mean) * lax.rsqrt(var + LN_EPS)
        o_ref[...] = (norm * g_ref[...] + bb_ref[...]).astype(o_ref.dtype)


def dense_res_ln(x, w, b, residual, gamma, beta, tm=256, tk=512):
    """out = LayerNorm(x @ w + b + residual) * gamma + beta, fully fused."""
    M, K = x.shape
    N = w.shape[1]                    # LN over full N -> N not tiled
    TM = _pick_tile(M, tm, 8)
    TK = _pick_tile(K, tk, 128)
    assert M % TM == 0 and K % TK == 0
    grid = (M // TM, K // TK)
    cost = pl.CostEstimate(
        flops=2 * M * N * K + 8 * M * N,
        transcendentals=M,
        bytes_accessed=4 * (M * K + K * N + 3 * M * N + 3 * N))
    return pl.pallas_call(
        _dense_res_ln_kernel,
        out_shape=jax.ShapeDtypeStruct((M, N), jnp.float32),
        grid=grid,
        in_specs=[
            pl.BlockSpec((TM, TK), lambda i, k: (i, k)),
            pl.BlockSpec((TK, N), lambda i, k: (k, 0)),
            pl.BlockSpec((1, N), lambda i, k: (0, 0)),
            pl.BlockSpec((TM, N), lambda i, k: (i, 0)),
            pl.BlockSpec((1, N), lambda i, k: (0, 0)),
            pl.BlockSpec((1, N), lambda i, k: (0, 0)),
        ],
        out_specs=pl.BlockSpec((TM, N), lambda i, k: (i, 0)),
        scratch_shapes=[pltpu.VMEM((TM, N), jnp.float32)],
        compiler_params=pltpu.CompilerParams(
            dimension_semantics=("parallel", "arbitrary")),
        cost_estimate=cost,
    )(x, w, b.reshape(1, N), residual, gamma.reshape(1, N), beta.reshape(1, N))


# ----------------------------- LayerNorm only (embeddings) ----------------
def _ln_kernel(x_ref, g_ref, b_ref, o_ref):
    y = x_ref[...]
    mean = jnp.mean(y, axis=-1, keepdims=True)
    var = jnp.mean(jnp.square(y - mean), axis=-1, keepdims=True)
    norm = (y - mean) * lax.rsqrt(var + LN_EPS)
    o_ref[...] = norm * g_ref[...] + b_ref[...]


def layernorm(x, gamma, beta, tm=512):
    M, H = x.shape
    TM = _pick_tile(M, tm, 8)
    assert M % TM == 0
    return pl.pallas_call(
        _ln_kernel,
        out_shape=jax.ShapeDtypeStruct((M, H), jnp.float32),
        grid=(M // TM,),
        in_specs=[
            pl.BlockSpec((TM, H), lambda i: (i, 0)),
            pl.BlockSpec((1, H), lambda i: (0, 0)),
            pl.BlockSpec((1, H), lambda i: (0, 0)),
        ],
        out_specs=pl.BlockSpec((TM, H), lambda i: (i, 0)),
        compiler_params=pltpu.CompilerParams(
            dimension_semantics=("parallel",)),
    )(x, gamma.reshape(1, H), beta.reshape(1, H))


# ----------------------------- attention -----------------------------
def _attn_kernel(qkv_ref, m_ref, o_ref, *, num_heads, head_dim, hidden, scale):
    """All heads of one batch element; lane-dense (S, H) context output."""
    full = qkv_ref[0]                 # (S, 3H) f32: [Q | K | V]
    m = m_ref[0]                      # (1, S) additive key mask
    ctx = []
    for h in range(num_heads):        # static unroll; heads folded into body
        lo, hi = h * head_dim, (h + 1) * head_dim
        q = full[:, lo:hi].astype(jnp.bfloat16)
        k = full[:, hidden + lo:hidden + hi].astype(jnp.bfloat16)
        v = full[:, 2 * hidden + lo:2 * hidden + hi].astype(jnp.bfloat16)
        # contract last dims directly: no K transpose (MXU-native layout)
        s = lax.dot_general(q, k, (((1,), (1,)), ((), ())),
                            preferred_element_type=jnp.float32)
        s = s * scale + m
        s = s - jnp.max(s, axis=-1, keepdims=True)
        e = jnp.exp(s)
        p = e * pl.reciprocal(jnp.sum(e, axis=-1, keepdims=True), approx=True)
        ctx.append(lax.dot_general(p.astype(jnp.bfloat16), v,
                                   (((1,), (0,)), ((), ())),
                                   preferred_element_type=jnp.float32))
    o_ref[0] = jnp.concatenate(ctx, axis=-1)     # single lane-dense store


def attention(qkv, add_mask):
    """qkv: (B, S, 3H) fused Q|K|V slab; add_mask: (B, 1, S) additive mask."""
    B, S, threeH = qkv.shape
    H = threeH // 3
    scale = 1.0 / float(HEAD_DIM) ** 0.5
    cost = pl.CostEstimate(
        flops=4 * B * NUM_HEADS * S * S * HEAD_DIM,
        transcendentals=B * NUM_HEADS * S * S,
        bytes_accessed=4 * (B * S * threeH + B * S + B * S * H))
    return pl.pallas_call(
        functools.partial(_attn_kernel, num_heads=NUM_HEADS,
                          head_dim=HEAD_DIM, hidden=H, scale=scale),
        out_shape=jax.ShapeDtypeStruct((B, S, H), jnp.float32),
        grid=(B,),
        in_specs=[
            pl.BlockSpec((1, S, threeH), lambda b: (b, 0, 0)),
            pl.BlockSpec((1, 1, S), lambda b: (b, 0, 0)),
        ],
        out_specs=pl.BlockSpec((1, S, H), lambda b: (b, 0, 0)),
        compiler_params=pltpu.CompilerParams(
            dimension_semantics=("parallel",)),
        cost_estimate=cost,
    )(qkv, add_mask)


# ----------------------------- parameters -----------------------------
def init_params(key):
    def nrm(k, shape):
        return 0.02 * jax.random.normal(k, shape, dtype=jnp.float32)

    keys = iter(jax.random.split(key, 4 + NUM_LAYERS * 4))
    fc_w = nrm(next(keys), (HIDDEN, LABEL_NUM))
    p = {
        "word_emb": nrm(next(keys), (VOCAB, HIDDEN)),
        "pos_emb": nrm(next(keys), (MAX_POS, HIDDEN)),
        "type_emb": nrm(next(keys), (2, HIDDEN)),
        "emb_ln_g": jnp.ones((HIDDEN,), jnp.float32),
        "emb_ln_b": jnp.zeros((HIDDEN,), jnp.float32),
        # classifier head padded to lane-dense width; real cols are [:LABEL_NUM]
        "fc_w_pad": jnp.zeros((HIDDEN, FC_PAD), jnp.float32).at[:, :LABEL_NUM].set(fc_w),
        "fc_b_pad": jnp.zeros((FC_PAD,), jnp.float32),
        "layers": [],
    }
    for _ in range(NUM_LAYERS):
        layer = {
            # fused Q|K|V projection
            "wqkv": nrm(next(keys), (HIDDEN, 3 * HIDDEN)),
            "bqkv": jnp.zeros((3 * HIDDEN,), jnp.float32),
            "wo": nrm(next(keys), (HIDDEN, HIDDEN)), "bo": jnp.zeros((HIDDEN,), jnp.float32),
            "ln1_g": jnp.ones((HIDDEN,), jnp.float32), "ln1_b": jnp.zeros((HIDDEN,), jnp.float32),
            "wi": nrm(next(keys), (HIDDEN, FFN)), "bi": jnp.zeros((FFN,), jnp.float32),
            "wf": nrm(next(keys), (FFN, HIDDEN)), "bf": jnp.zeros((HIDDEN,), jnp.float32),
            "ln2_g": jnp.ones((HIDDEN,), jnp.float32), "ln2_b": jnp.zeros((HIDDEN,), jnp.float32),
        }
        p["layers"].append(layer)
    return p


# ----------------------------- forward -----------------------------
def bert_classifier_forward(params, token_ids, attention_mask, label=None):
    B, S = token_ids.shape
    H = HIDDEN

    # --- embeddings (gather is glue; LN runs in a Pallas kernel, no fake residual) ---
    emb = (params["word_emb"][token_ids]
           + params["pos_emb"][jnp.arange(S)][None, :, :]
           + params["type_emb"][0][None, None, :])               # (B, S, H)
    h = layernorm(emb.reshape(B * S, H), params["emb_ln_g"], params["emb_ln_b"])

    # additive attention mask: 0 where attended, -1e9 where padded
    add_mask = ((1.0 - attention_mask.astype(jnp.float32)) * -1e9).reshape(B, 1, S)

    for lyr in params["layers"]:
        # fused QKV projection -> (B*S, 3H); attention consumes the slab directly
        qkv = dense(h, lyr["wqkv"], lyr["bqkv"])
        ctx = attention(qkv.reshape(B, S, 3 * H), add_mask)       # (B, S, H)
        # output projection + residual + LayerNorm1, fused
        h = dense_res_ln(ctx.reshape(B * S, H), lyr["wo"], lyr["bo"],
                         h, lyr["ln1_g"], lyr["ln1_b"])
        # feed-forward: intermediate GELU, then FFN-out + residual + LayerNorm2 fused
        inter = dense(h, lyr["wi"], lyr["bi"], activation="gelu")
        h = dense_res_ln(inter, lyr["wf"], lyr["bf"],
                         h, lyr["ln2_g"], lyr["ln2_b"])

    # encoder(x)[0][:, 0, :] -> CLS token
    cls = h.reshape(B, S, H)[:, 0, :]                              # (B, H)

    # self.dropout(x): eval-mode dropout is identity.
    # TODO(synk): training-mode stochastic dropout (p=0.1) not applied.

    # lane-dense padded classifier matmul; slice real logits outside the kernel
    rows = max(8, ((B + 7) // 8) * 8)
    cls_p = jnp.zeros((rows, H), jnp.float32).at[:B].set(cls)
    logits = dense(cls_p, params["fc_w_pad"], params["fc_b_pad"])[:B, :LABEL_NUM]

    if label is None:
        return (None, logits)
    # CrossEntropyLoss == mean over batch of -log_softmax(logits)[label]
    logz = jax.nn.log_softmax(logits, axis=-1)
    loss = -jnp.mean(jnp.take_along_axis(logz, label[:, None], axis=-1))
    return (loss, logits)


# ----------------------------- main -----------------------------
if __name__ == "__main__":
    B, S = 2, 8
    key = jax.random.PRNGKey(0)
    k_tok, _ = jax.random.split(key)

    token_ids = jax.random.randint(k_tok, (B, S), 0, VOCAB, dtype=jnp.int32)
    attention_mask = jnp.array(
        [[1, 1, 1, 1, 1, 1, 1, 1],
         [1, 1, 1, 1, 1, 1, 0, 0]], dtype=jnp.int32)              # second seq padded

    params = init_params(jax.random.PRNGKey(42))

    loss, logits = bert_classifier_forward(params, token_ids, attention_mask, label=None)
    assert loss is None
    logits = jax.block_until_ready(logits)
    assert logits.shape == (B, LABEL_NUM)
    assert bool(jnp.all(jnp.isfinite(logits)))

    # also exercise the label path once
    labels = jnp.array([1, 3], dtype=jnp.int32)
    loss2, _ = bert_classifier_forward(params, token_ids, attention_mask, label=labels)
    loss2 = jax.block_until_ready(loss2)
    assert bool(jnp.isfinite(loss2))

    print("KERNEL_OK")
</pallas_src>

<mosaic_0001>
module attributes {stable_mosaic.version = 11 : i64} {
  func.func @_ln_kernel(%arg0: i32, %arg1: memref<16x128xf32, #tpu.memory_space<vmem>>, %arg2: memref<1x128xf32, #tpu.memory_space<vmem>>, %arg3: memref<1x128xf32, #tpu.memory_space<vmem>>, %arg4: memref<16x128xf32, #tpu.memory_space<vmem>>) attributes {dimension_semantics = [#tpu.dimension_semantics<parallel>], iteration_bounds = array<i64: 1>, scalar_prefetch = 0 : i64, scratch_operands = 0 : i64, tpu.core_type = #tpu.core_type<tc>, window_params = [{transform_indices = @transform_0, window_bounds = array<i64: 16, 128>}, {pipeline_mode = #tpu.pipeline_mode<synchronous>, transform_indices = @transform_1, window_bounds = array<i64: 1, 128>}, {pipeline_mode = #tpu.pipeline_mode<synchronous>, transform_indices = @transform_2, window_bounds = array<i64: 1, 128>}, {transform_indices = @transform_3, window_bounds = array<i64: 16, 128>}]} {
    %c0 = arith.constant 0 : index
    %c0_0 = arith.constant 0 : index
    %0 = vector.load %arg1[%c0, %c0_0] : memref<16x128xf32, #tpu.memory_space<vmem>>, vector<16x128xf32>
    %cst = arith.constant dense<0.000000e+00> : vector<16xf32>
    %1 = vector.multi_reduction <add>, %0, %cst [1] : vector<16x128xf32> to vector<16xf32>
    %2 = vector.shape_cast %1 : vector<16xf32> to vector<16x1xf32>
    %cst_1 = arith.constant 1.280000e+02 : f32
    %3 = vector.broadcast %cst_1 : f32 to vector<16x1xf32>
    %4 = arith.divf %2, %3 : vector<16x1xf32>
    %5 = vector.broadcast %4 : vector<16x1xf32> to vector<16x128xf32>
    %6 = arith.subf %0, %5 : vector<16x128xf32>
    %7 = arith.mulf %6, %6 : vector<16x128xf32>
    %cst_2 = arith.constant dense<0.000000e+00> : vector<16xf32>
    %8 = vector.multi_reduction <add>, %7, %cst_2 [1] : vector<16x128xf32> to vector<16xf32>
    %9 = vector.shape_cast %8 : vector<16xf32> to vector<16x1xf32>
    %cst_3 = arith.constant 1.280000e+02 : f32
    %10 = vector.broadcast %cst_3 : f32 to vector<16x1xf32>
    %11 = arith.divf %9, %10 : vector<16x1xf32>
    %12 = vector.broadcast %4 : vector<16x1xf32> to vector<16x128xf32>
    %13 = arith.subf %0, %12 : vector<16x128xf32>
    %cst_4 = arith.constant 9.99999996E-13 : f32
    %14 = vector.broadcast %cst_4 : f32 to vector<16x1xf32>
    %15 = arith.addf %11, %14 : vector<16x1xf32>
    %16 = math.rsqrt %15 : vector<16x1xf32>
    %17 = vector.broadcast %16 : vector<16x1xf32> to vector<16x128xf32>
    %18 = arith.mulf %13, %17 : vector<16x128xf32>
    %c0_5 = arith.constant 0 : index
    %c0_6 = arith.constant 0 : index
    %19 = vector.load %arg2[%c0_5, %c0_6] : memref<1x128xf32, #tpu.memory_space<vmem>>, vector<1x128xf32>
    %20 = vector.broadcast %19 : vector<1x128xf32> to vector<16x128xf32>
    %21 = arith.mulf %18, %20 : vector<16x128xf32>
    %c0_7 = arith.constant 0 : index
    %c0_8 = arith.constant 0 : index
    %22 = vector.load %arg3[%c0_7, %c0_8] : memref<1x128xf32, #tpu.memory_space<vmem>>, vector<1x128xf32>
    %23 = vector.broadcast %22 : vector<1x128xf32> to vector<16x128xf32>
    %24 = arith.addf %21, %23 : vector<16x128xf32>
    %c0_9 = arith.constant 0 : index
    %c0_10 = arith.constant 0 : index
    %25 = vector.load %arg4[%c0_9, %c0_10] : memref<16x128xf32, #tpu.memory_space<vmem>>, vector<16x128xf32>
    tpu.vector_store %arg4[%c0_9, %c0_10], %24 {strides = array<i32>} : memref<16x128xf32, #tpu.memory_space<vmem>>, vector<16x128xf32>,
    return
  }
  func.func @transform_0(%arg0: i32) -> (i32, i32) {
    %c0_i32 = arith.constant 0 : i32
    %c0_i32_0 = arith.constant 0 : i32
    return %arg0, %c0_i32 : i32, i32
  }
  func.func @transform_1(%arg0: i32) -> (i32, i32) {
    %c0_i32 = arith.constant 0 : i32
    %c0_i32_0 = arith.constant 0 : i32
    %c0_i32_1 = arith.constant 0 : i32
    return %c0_i32, %c0_i32_0 : i32, i32
  }
  func.func @transform_2(%arg0: i32) -> (i32, i32) {
    %c0_i32 = arith.constant 0 : i32
    %c0_i32_0 = arith.constant 0 : i32
    %c0_i32_1 = arith.constant 0 : i32
    return %c0_i32, %c0_i32_0 : i32, i32
  }
  func.func @transform_3(%arg0: i32) -> (i32, i32) {
    %c0_i32 = arith.constant 0 : i32
    %c0_i32_0 = arith.constant 0 : i32
    return %arg0, %c0_i32 : i32, i32
  }
}

</mosaic_0001>

<bundles_post_ra>
// kernel: tpu_custom_call.1
= control target key start
LH: loop header
LB: loop body
LE: loop exit
PB: predicated region body
PF: predicated region fallthrough
CT: control target
= control target key end

     0   :  { %8 = vsyncpa [#allocation3], 0  ;;  %s209_s0 = inlined_call_operand.hbm [shape: f32[16,128], index: 0, kind: input, shape index: {}]   ;;  %s210_s1 = inlined_call_operand.vmem [shape: f32[1,128], index: 1, kind: input, shape index: {}]   ;;  %s211_s2 = inlined_call_operand.vmem [shape: f32[1,128], index: 2, kind: input, shape index: {}]   ;;  %s212_s3 = inlined_call_operand.hbm [shape: f32[16,128], index: 3, kind: output, shape index: {}]  }
   0x1   :  { %9 = vsyncpa [#allocation4], 0  ;;  %s149_s12 = smov [#allocation2]   ;;  %s101_s16 = scalar_lea.hbm %s209_s0, 256 }
   0x2   :  { %s15_s13 = sshll.u32 %s149_s12, 4  ;;  %p102_p0 = scmp.ne.s32.totalorder %s209_s0, %s101_s16  ;;  %s16_s13 = int_to_ptr.vmem [resolvable:$true] %s15_s13 }
   0x3   :  { %p105_p1 = scmp.lt.u32.totalorder %s101_s16, %s209_s0 }
   0x5   :  { %p107_p2 = pnand %p105_p1, %p102_p0 }
   0x7   :  { %110 = shalt.err (!%p107_p2)
}
   0x8   :  { %s111_s21 = scalar_lea.vmem %s16_s13, 256  ;;  %p116_p4 = scmp.lt.s32.totalorder %s16_s13, %s16_s13 }
   0x9   :  { %p112_p3 = scmp.ne.s32.totalorder %s16_s13, %s111_s21  ;;  %p117_p5 = scmp.lt.s32.totalorder %s111_s21, %s111_s21 }
   0xb   :  { %p118_p6 = por %p117_p5, %p116_p4 }
   0xd   :  { %p119_p7 = pnand %p118_p6, %p112_p3 }
   0xf   :  { %122 = shalt.err (!%p119_p7)
}
  0x10   :  { %s150_s22 = smov 128   ;;  %s151_s23 = smov 8  }
  0x11   :  { %21 = dma.hbm_to_vmem [thread:$0]  %s209_s0, 256, %s16_s13, [#allocation3], %s150_s22, %s150_s22, %s151_s23  }
  0x12   :  { %145 = dma.done.wait [#allocation3], 256  }
  0x13   :  { %146 = vsyncadd [#allocation3], 4294967040  ;;  %v29_v0 = vld [vmem:[#allocation2] sm:$0xff]  ;;  %v30_v1 = vld [vmem:[#allocation2 + $0x8] sm:$0xff]  ;;  %s152_s29 = smov [#allocation5]  }
  0x14   :  { %31 = vadd.xlane.f32.xlu0 %v29_v0  ;;  %v91_v17 = vld [vmem:[%s210_s1] ss:$0 sm:$0xff]  ;;  %s79_s30 = sshll.u32 %s152_s29, 4  ;;  %s80_s30 = int_to_ptr.vmem [resolvable:$true] %s79_s30 }
  0x15   :  { %v92_v19 = vld [vmem:[%s211_s2] ss:$0 sm:$0xff]  ;;  %s123_s4 = scalar_lea.vmem %s80_s30, 256  ;;  %p128_p9 = scmp.lt.s32.totalorder %s80_s30, %s80_s30 }
  0x16   :  { %p124_p8 = scmp.ne.s32.totalorder %s80_s30, %s123_s4  ;;  %p129_p10 = scmp.lt.s32.totalorder %s123_s4, %s123_s4 }
  0x18   :  { %33 = vadd.xlane.f32.xlu0 %v30_v1  ;;  %p130_p11 = por %p129_p10, %p128_p9 }
  0x1a   :  { %p131_p12 = pnand %p130_p11, %p124_p8 }
  0xa1   :  { %v32_v2 = vpop.xlane.xlu0 %31 }
  0xa2   :  { %v36_v3 = vmul.f32 0.0078125, %v32_v2 }
  0xa4   :  { %v38_v4 = vsub.f32 %v29_v0, %v36_v3 }
  0xa5   :  { %v34_v5 = vpop.xlane.xlu0 %33 }
  0xa6   :  { %v37_v6 = vmul.f32 0.0078125, %v34_v5  ;;  %v40_v7 = vmul.f32 %v38_v4, %v38_v4 }
  0xa8   :  { %v39_v8 = vsub.f32 %v30_v1, %v37_v6  ;;  %42 = vadd.xlane.f32.xlu1 %v40_v7 }
  0xaa   :  { %v41_v9 = vmul.f32 %v39_v8, %v39_v8 }
  0xac   :  { %44 = vadd.xlane.f32.xlu1 %v41_v9 }
 0x135   :  { %v43_v10 = vpop.xlane.xlu1 %42 }
 0x136   :  { %v46_v11 = vmul.f32 0.0078125, %v43_v10 }
 0x138   :  { %v48_v12 = vadd.f32 1e-12, %v46_v11 }
 0x139   :  { %v45_v13 = vpop.xlane.xlu1 %44 }
 0x13a   :  { %97 = vrsqrt.f32 %v48_v12  ;;  %v47_v14 = vmul.f32 0.0078125, %v45_v13 }
 0x13c   :  { %v49_v15 = vadd.f32 1e-12, %v47_v14 }
 0x13e   :  { %99 = vrsqrt.f32 %v49_v15 }
 0x144   :  { %v98_v16 = vpop.eup %97 }
 0x145   :  { %v52_v18 = vmul.f32 %v98_v16, %v38_v4 }
 0x147   :  { %v61_v20 = vmul.f32 %v91_v17, %v52_v18 }
 0x148   :  { %v100_v21 = vpop.eup %99 }
 0x149   :  { %v53_v22 = vmul.f32 %v100_v21, %v39_v8  ;;  %v70_v23 = vadd.f32 %v92_v19, %v61_v20 }
 0x14b   :  { %v62_v24 = vmul.f32 %v91_v17, %v53_v22  ;;  %72 = vst [vmem:[#allocation5] sm:$0xff] %v70_v23 }
 0x14d   :  { %v71_v25 = vadd.f32 %v92_v19, %v62_v24 }
 0x14f   :  { %73 = vst [vmem:[#allocation5 + $0x8] sm:$0xff] %v71_v25 }
 0x150   :  { %134 = shalt.err (!%p131_p12)
}
 0x151   :  { %s135_s5 = scalar_lea.hbm %s212_s3, 256 }
 0x152   :  { %p136_p13 = scmp.ne.s32.totalorder %s212_s3, %s135_s5  ;;  %p139_p0 = scmp.lt.u32.totalorder %s135_s5, %s212_s3 }
 0x154   :  { %p141_p1 = pnand %p139_p0, %p136_p13 }
 0x156   :  { %144 = shalt.err (!%p141_p1)
}
 0x157   :  { %85 = dma.vmem_to_hbm [thread:$0]  %s80_s30, 256, %s212_s3, [#allocation4], %s150_s22, %s150_s22, %s151_s23  }
 0x158   :  { %147 = dma.done.wait [#allocation4], 256  }
 0x159   :  { %148 = vsyncadd [#allocation4], 4294967040 }
 0x15a   :  { %89 = vsyncpa [#allocation3], 1 }
 0x15b   :  { %90 = vsyncpa [#allocation4], 1 }

</bundles_post_ra>
